<compile_context>
chip_gen: v7x
topology: tpu7x:2x2x1
jax: 0.10.0
libtpu: 0.0.40
codegen_flags: <defaults>
</compile_context>

<pallas_src>
import jax
import jax.numpy as jnp
from jax.experimental import pallas as pl
from jax.experimental.pallas import tpu as pltpu


LANE = 128        # lane-padded width for hidden / readout dims
N_WBLOCKS = 5     # padded 128x128 weight blocks in the pack (after folding embedding_h)


def _round_up(v, m):
    return (v + m - 1) // m * m


# -----------------------------------------------------------------------------
# Kernel
# -----------------------------------------------------------------------------
def _mlpnet_kernel(x_ref, w01_ref, wpack_ref, bias_ref, o_ref):
    # x_ref    : (TILE, in_dim)     bf16 node-feature tile (streamed over the grid)
    # w01_ref  : (in_dim, LANE)     bf16 fused embedding_h @ feat_mlp[0] weight (resident)
    # wpack_ref: (5*LANE, LANE)     bf16, five zero-padded 128x128 weights (resident)
    # bias_ref : (8, LANE)          f32 biases, one per row (resident)
    # o_ref    : (TILE, C_PAD)      f32 logits (only first n_classes cols meaningful)
    bf16 = jnp.bfloat16
    x = x_ref[...]
    bias = bias_ref[...]                              # one aligned (8,128) f32 load

    def w(i):                                         # i-th padded weight block (static slice)
        lo = i * LANE
        return wpack_ref[lo:lo + LANE, :]

    def b(i):                                         # (1, LANE) bias row, sublane-broadcast on add
        return bias[i:i + 1, :]

    def mm(a, wi):                                    # bf16 MXU matmul, f32 accumulation
        return jnp.dot(a.astype(bf16), wi, preferred_element_type=jnp.float32)

    # embedding_h folded into feat_mlp linear 0 (dropout = identity at eval), then ReLU
    h = jnp.maximum(mm(x, w01_ref[...]) + b(0), 0.0)
    # feat_mlp linear 1 + ReLU
    h = jnp.maximum(mm(h, w(0)) + b(1), 0.0)
    # gates: h = sigmoid(gates(h)) * h   (padded lanes stay exactly zero: sigmoid(0) * 0)
    h = jax.nn.sigmoid(mm(h, w(1)) + b(2)) * h
    # MLPReadout (L=2): FC -> ReLU -> FC -> ReLU -> FC
    y = jnp.maximum(mm(h, w(2)) + b(3), 0.0)
    y = jnp.maximum(mm(y, w(3)) + b(4), 0.0)
    y = mm(y, w(4)) + b(5)

    # Narrow logits store: only C_PAD lanes written back (~16x fewer HBM bytes than a
    # 128-lane padded slab); block's last dim equals the full output width, so it is legal.
    o_ref[...] = y[:, : o_ref.shape[1]].astype(o_ref.dtype)


# -----------------------------------------------------------------------------
# Weight preparation: fold embedding into feat_mlp[0], pad to 128 lanes, pack, cast bf16
# -----------------------------------------------------------------------------
def _prep_weights(params):
    f32, bf16 = jnp.float32, jnp.bfloat16
    w_emb = params["w_emb"].astype(f32)
    b_emb = params["b_emb"].astype(f32)
    w_f0 = params["w_f0"].astype(f32)
    b_f0 = params["b_f0"].astype(f32)

    # Fold: (x @ W_emb + b_emb) @ W_f0 + b_f0 == x @ W01 + b01   (no nonlinearity between)
    w01 = w_emb @ w_f0                     # (in_dim, hidden), computed in f32
    b01 = b_emb @ w_f0 + b_f0              # (1, hidden)
    in_dim, hidden = w01.shape

    def pad_w(wm):                         # (r, c) -> (LANE, LANE), zero padded
        wm = wm.astype(f32)
        r, c = wm.shape
        return jnp.zeros((LANE, LANE), f32).at[:r, :c].set(wm)

    def pad_b(bv):                         # (1, c) -> (LANE,), zero padded
        bv = bv.astype(f32).reshape(-1)
        return jnp.zeros((LANE,), f32).at[: bv.shape[0]].set(bv)

    w01_p = jnp.zeros((in_dim, LANE), f32).at[:, :hidden].set(w01).astype(bf16)

    ws = [params["w_f1"], params["w_g"], params["w_r0"], params["w_r1"], params["w_r2"]]
    bs = [b01, params["b_f1"], params["b_g"], params["b_r0"], params["b_r1"], params["b_r2"]]

    wpack = jnp.concatenate([pad_w(wm) for wm in ws], axis=0).astype(bf16)  # (640, 128) bf16

    bias = jnp.zeros((8, LANE), f32)
    for i, bv in enumerate(bs):
        bias = bias.at[i].set(pad_b(bv))
    return w01_p, wpack, bias


# -----------------------------------------------------------------------------
# Tiling: aim for >= target_steps grid steps with 128..2048-row (128-aligned) tiles
# -----------------------------------------------------------------------------
def _choose_tile(n_rows, *, target_steps=8, min_tile=128, max_tile=2048):
    t = -(-n_rows // target_steps)         # cdiv
    t = _round_up(max(t, 1), 128)
    return max(min_tile, min(t, max_tile))


# -----------------------------------------------------------------------------
# Wrapper
# -----------------------------------------------------------------------------
def mlpnet_forward(x, params, *, tile_n=None):
    """x: (N, in_dim) float; params: dict of weight/bias arrays. Returns (N, n_classes) f32."""
    x = jnp.asarray(x)
    N, in_dim = x.shape
    n_classes = params["w_r2"].shape[1]
    assert n_classes <= LANE, "n_classes must fit in one 128-lane tile"
    c_pad = max(8, _round_up(n_classes, 8))

    if tile_n is None:
        tile_n = _choose_tile(N)
    else:
        tile_n = _round_up(tile_n, 128)

    # Pad node count up to a tile multiple (extra zero rows are computed then sliced off).
    n_pad = _round_up(N, tile_n)
    xb = x.astype(jnp.bfloat16)
    if n_pad != N:
        xb = jnp.pad(xb, ((0, n_pad - N), (0, 0)))

    w01_p, wpack, bias = _prep_weights(params)
    wpack_rows = wpack.shape[0]
    grid_steps = n_pad // tile_n

    in_specs = [
        pl.BlockSpec((tile_n, in_dim), lambda i: (i, 0)),        # streamed node features (bf16)
        pl.BlockSpec((in_dim, LANE), lambda i: (0, 0)),          # fused first weight (resident)
        pl.BlockSpec((wpack_rows, LANE), lambda i: (0, 0)),      # packed weights (resident)
        pl.BlockSpec((8, LANE), lambda i: (0, 0)),               # f32 biases (resident)
    ]
    out_spec = pl.BlockSpec((tile_n, c_pad), lambda i: (i, 0))   # narrow logits writeback

    # VMEM budget (bytes), sized against v7x's 64 MiB physical VMEM with headroom.
    est_bytes = (
        2 * 2 * tile_n * in_dim                    # x tile (bf16), double-buffered
        + 2 * 4 * tile_n * LANE                    # output tile (lane-padded in VMEM), double-buffered
        + 2 * (2 * (in_dim + wpack_rows) * LANE)   # resident bf16 weights (double-buffer worst case)
        + 2 * 4 * 8 * LANE                         # f32 biases
        + 6 * 4 * tile_n * LANE                    # live f32/bf16 activation slabs
    )
    vmem_limit = min(max(est_bytes + (8 << 20), 16 << 20), 48 << 20)

    out = pl.pallas_call(
        _mlpnet_kernel,
        out_shape=jax.ShapeDtypeStruct((n_pad, c_pad), jnp.float32),
        grid_spec=pltpu.PrefetchScalarGridSpec(
            num_scalar_prefetch=0,
            grid=(grid_steps,),
            in_specs=in_specs,
            out_specs=out_spec,
        ),
        compiler_params=pltpu.CompilerParams(
            dimension_semantics=("parallel",),   # many independent node tiles -> 2-TC shard on v7x
            vmem_limit_bytes=vmem_limit,
        ),
    )(xb, w01_p, wpack, bias)

    return out[:N, :n_classes]


# -----------------------------------------------------------------------------
# Deterministic parameter init (PyTorch nn.Linear-style uniform(-1/sqrt(fan_in)))
# -----------------------------------------------------------------------------
def init_params(key, in_dim, hidden, n_classes):
    def linear(key, fan_in, fan_out):
        kw, kb = jax.random.split(key)
        bound = 1.0 / (fan_in ** 0.5)
        w = jax.random.uniform(kw, (fan_in, fan_out), jnp.float32, -bound, bound)
        b = jax.random.uniform(kb, (1, fan_out), jnp.float32, -bound, bound)
        return w, b

    keys = jax.random.split(key, 8)
    p = {}
    p["w_emb"], p["b_emb"] = linear(keys[0], in_dim, hidden)
    p["w_f0"], p["b_f0"] = linear(keys[1], hidden, hidden)
    p["w_f1"], p["b_f1"] = linear(keys[2], hidden, hidden)
    p["w_g"], p["b_g"] = linear(keys[3], hidden, hidden)
    p["w_r0"], p["b_r0"] = linear(keys[4], hidden, hidden // 2)
    p["w_r1"], p["b_r1"] = linear(keys[5], hidden // 2, hidden // 4)
    p["w_r2"], p["b_r2"] = linear(keys[6], hidden // 4, n_classes)
    return p


# Pure-JAX f32 reference (unfolded, mirrors the PyTorch module) for a sanity check.
def mlpnet_ref(x, p):
    h = x @ p["w_emb"] + p["b_emb"]
    h = jnp.maximum(h @ p["w_f0"] + p["b_f0"], 0.0)
    h = jnp.maximum(h @ p["w_f1"] + p["b_f1"], 0.0)
    h = jax.nn.sigmoid(h @ p["w_g"] + p["b_g"]) * h
    y = jnp.maximum(h @ p["w_r0"] + p["b_r0"], 0.0)
    y = jnp.maximum(y @ p["w_r1"] + p["b_r1"], 0.0)
    return y @ p["w_r2"] + p["b_r2"]


if __name__ == "__main__":
    # Small shapes consistent with the module: L=2 feat_mlp layers, gated=True.
    # N=1024 nodes -> 8 pipelined grid steps of 128 rows each.
    N, in_dim, hidden, n_classes = 1024, 16, 32, 8

    key = jax.random.PRNGKey(0)
    k_x, k_p = jax.random.split(key)
    x = jax.random.normal(k_x, (N, in_dim), dtype=jnp.float32)
    params = init_params(k_p, in_dim, hidden, n_classes)

    out = jax.block_until_ready(mlpnet_forward(x, params))

    ref = mlpnet_ref(x, params)
    assert out.shape == (N, n_classes)
    # bf16 weight/activation streaming -> loosen tolerance vs the f32 reference.
    max_err = float(jnp.max(jnp.abs(out - ref)))
    assert jnp.allclose(out, ref, atol=2e-2, rtol=2e-2), f"mismatch vs reference (max|err|={max_err})"

    print("KERNEL_OK")
</pallas_src>

<mosaic_0001>
module attributes {stable_mosaic.version = 11 : i64} {
  func.func @_mlpnet_kernel(%arg0: i32, %arg1: memref<128x16xbf16, #tpu.memory_space<vmem>>, %arg2: memref<16x128xbf16, #tpu.memory_space<vmem>>, %arg3: memref<640x128xbf16, #tpu.memory_space<vmem>>, %arg4: memref<8x128xf32, #tpu.memory_space<vmem>>, %arg5: memref<128x8xf32, #tpu.memory_space<vmem>>) attributes {dimension_semantics = [#tpu.dimension_semantics<parallel>], iteration_bounds = array<i64: 8>, scalar_prefetch = 0 : i64, scratch_operands = 0 : i64, tpu.core_type = #tpu.core_type<tc>, window_params = [{transform_indices = @transform_0, window_bounds = array<i64: 128, 16>}, {pipeline_mode = #tpu.pipeline_mode<synchronous>, transform_indices = @transform_1, window_bounds = array<i64: 16, 128>}, {pipeline_mode = #tpu.pipeline_mode<synchronous>, transform_indices = @transform_2, window_bounds = array<i64: 640, 128>}, {pipeline_mode = #tpu.pipeline_mode<synchronous>, transform_indices = @transform_3, window_bounds = array<i64: 8, 128>}, {transform_indices = @transform_4, window_bounds = array<i64: 128, 8>}]} {
    %c0 = arith.constant 0 : index
    %c0_0 = arith.constant 0 : index
    %0 = vector.load %arg1[%c0, %c0_0] : memref<128x16xbf16, #tpu.memory_space<vmem>>, vector<128x16xbf16>
    %c0_1 = arith.constant 0 : index
    %c0_2 = arith.constant 0 : index
    %1 = vector.load %arg4[%c0_1, %c0_2] : memref<8x128xf32, #tpu.memory_space<vmem>>, vector<8x128xf32>
    %c0_3 = arith.constant 0 : index
    %c0_4 = arith.constant 0 : index
    %2 = vector.load %arg2[%c0_3, %c0_4] : memref<16x128xbf16, #tpu.memory_space<vmem>>, vector<16x128xbf16>
    %cst = arith.constant dense<0.000000e+00> : vector<128x128xf32>
    %3 = tpu.matmul %0, %2, %cst {dimension_numbers = #tpu.dot_dimension_numbers<[1], [0], [0], [1], [0, 0, 1, 1], [], []>} : vector<128x16xbf16>, vector<16x128xbf16>, vector<128x128xf32> -> vector<128x128xf32>
    %4 = vector.extract_strided_slice %1 {offsets = [0, 0], sizes = [1, 128], strides = [1, 1]} : vector<8x128xf32> to vector<1x128xf32>
    %5 = vector.broadcast %4 : vector<1x128xf32> to vector<128x128xf32>
    %6 = arith.addf %3, %5 : vector<128x128xf32>
    %cst_5 = arith.constant 0.000000e+00 : f32
    %7 = vector.broadcast %cst_5 : f32 to vector<128x128xf32>
    %8 = arith.maximumf %6, %7 : vector<128x128xf32>
    %c0_6 = arith.constant 0 : index
    %c0_7 = arith.constant 0 : index
    %9 = vector.load %arg3[%c0_6, %c0_7] : memref<640x128xbf16, #tpu.memory_space<vmem>>, vector<128x128xbf16>
    %10 = arith.truncf %8 : vector<128x128xf32> to vector<128x128xbf16>
    %cst_8 = arith.constant dense<0.000000e+00> : vector<128x128xf32>
    %11 = tpu.matmul %10, %9, %cst_8 {dimension_numbers = #tpu.dot_dimension_numbers<[1], [0], [0], [1], [0, 0, 1, 1], [], []>} : vector<128x128xbf16>, vector<128x128xbf16>, vector<128x128xf32> -> vector<128x128xf32>
    %12 = vector.extract_strided_slice %1 {offsets = [1, 0], sizes = [1, 128], strides = [1, 1]} : vector<8x128xf32> to vector<1x128xf32>
    %13 = vector.broadcast %12 : vector<1x128xf32> to vector<128x128xf32>
    %14 = arith.addf %11, %13 : vector<128x128xf32>
    %cst_9 = arith.constant 0.000000e+00 : f32
    %15 = vector.broadcast %cst_9 : f32 to vector<128x128xf32>
    %16 = arith.maximumf %14, %15 : vector<128x128xf32>
    %c128 = arith.constant 128 : index
    %c0_10 = arith.constant 0 : index
    %17 = vector.load %arg3[%c128, %c0_10] : memref<640x128xbf16, #tpu.memory_space<vmem>>, vector<128x128xbf16>
    %18 = arith.truncf %16 : vector<128x128xf32> to vector<128x128xbf16>
    %cst_11 = arith.constant dense<0.000000e+00> : vector<128x128xf32>
    %19 = tpu.matmul %18, %17, %cst_11 {dimension_numbers = #tpu.dot_dimension_numbers<[1], [0], [0], [1], [0, 0, 1, 1], [], []>} : vector<128x128xbf16>, vector<128x128xbf16>, vector<128x128xf32> -> vector<128x128xf32>
    %20 = vector.extract_strided_slice %1 {offsets = [2, 0], sizes = [1, 128], strides = [1, 1]} : vector<8x128xf32> to vector<1x128xf32>
    %21 = vector.broadcast %20 : vector<1x128xf32> to vector<128x128xf32>
    %22 = arith.addf %19, %21 : vector<128x128xf32>
    %23 = arith.negf %22 : vector<128x128xf32>
    %24 = math.exp %23 : vector<128x128xf32>
    %cst_12 = arith.constant 1.000000e+00 : f32
    %25 = vector.broadcast %cst_12 : f32 to vector<128x128xf32>
    %26 = arith.addf %25, %24 : vector<128x128xf32>
    %27 = arith.divf %25, %26 : vector<128x128xf32>
    %28 = arith.mulf %27, %16 : vector<128x128xf32>
    %c256 = arith.constant 256 : index
    %c0_13 = arith.constant 0 : index
    %29 = vector.load %arg3[%c256, %c0_13] : memref<640x128xbf16, #tpu.memory_space<vmem>>, vector<128x128xbf16>
    %30 = arith.truncf %28 : vector<128x128xf32> to vector<128x128xbf16>
    %cst_14 = arith.constant dense<0.000000e+00> : vector<128x128xf32>
    %31 = tpu.matmul %30, %29, %cst_14 {dimension_numbers = #tpu.dot_dimension_numbers<[1], [0], [0], [1], [0, 0, 1, 1], [], []>} : vector<128x128xbf16>, vector<128x128xbf16>, vector<128x128xf32> -> vector<128x128xf32>
    %32 = vector.extract_strided_slice %1 {offsets = [3, 0], sizes = [1, 128], strides = [1, 1]} : vector<8x128xf32> to vector<1x128xf32>
    %33 = vector.broadcast %32 : vector<1x128xf32> to vector<128x128xf32>
    %34 = arith.addf %31, %33 : vector<128x128xf32>
    %cst_15 = arith.constant 0.000000e+00 : f32
    %35 = vector.broadcast %cst_15 : f32 to vector<128x128xf32>
    %36 = arith.maximumf %34, %35 : vector<128x128xf32>
    %c384 = arith.constant 384 : index
    %c0_16 = arith.constant 0 : index
    %37 = vector.load %arg3[%c384, %c0_16] : memref<640x128xbf16, #tpu.memory_space<vmem>>, vector<128x128xbf16>
    %38 = arith.truncf %36 : vector<128x128xf32> to vector<128x128xbf16>
    %cst_17 = arith.constant dense<0.000000e+00> : vector<128x128xf32>
    %39 = tpu.matmul %38, %37, %cst_17 {dimension_numbers = #tpu.dot_dimension_numbers<[1], [0], [0], [1], [0, 0, 1, 1], [], []>} : vector<128x128xbf16>, vector<128x128xbf16>, vector<128x128xf32> -> vector<128x128xf32>
    %40 = vector.extract_strided_slice %1 {offsets = [4, 0], sizes = [1, 128], strides = [1, 1]} : vector<8x128xf32> to vector<1x128xf32>
    %41 = vector.broadcast %40 : vector<1x128xf32> to vector<128x128xf32>
    %42 = arith.addf %39, %41 : vector<128x128xf32>
    %cst_18 = arith.constant 0.000000e+00 : f32
    %43 = vector.broadcast %cst_18 : f32 to vector<128x128xf32>
    %44 = arith.maximumf %42, %43 : vector<128x128xf32>
    %c512 = arith.constant 512 : index
    %c0_19 = arith.constant 0 : index
    %45 = vector.load %arg3[%c512, %c0_19] : memref<640x128xbf16, #tpu.memory_space<vmem>>, vector<128x128xbf16>
    %46 = arith.truncf %44 : vector<128x128xf32> to vector<128x128xbf16>
    %cst_20 = arith.constant dense<0.000000e+00> : vector<128x128xf32>
    %47 = tpu.matmul %46, %45, %cst_20 {dimension_numbers = #tpu.dot_dimension_numbers<[1], [0], [0], [1], [0, 0, 1, 1], [], []>} : vector<128x128xbf16>, vector<128x128xbf16>, vector<128x128xf32> -> vector<128x128xf32>
    %48 = vector.extract_strided_slice %1 {offsets = [5, 0], sizes = [1, 128], strides = [1, 1]} : vector<8x128xf32> to vector<1x128xf32>
    %49 = vector.broadcast %48 : vector<1x128xf32> to vector<128x128xf32>
    %50 = arith.addf %47, %49 : vector<128x128xf32>
    %51 = vector.extract_strided_slice %50 {offsets = [0, 0], sizes = [128, 8], strides = [1, 1]} : vector<128x128xf32> to vector<128x8xf32>
    %c0_21 = arith.constant 0 : index
    %c0_22 = arith.constant 0 : index
    %52 = vector.load %arg5[%c0_21, %c0_22] : memref<128x8xf32, #tpu.memory_space<vmem>>, vector<128x8xf32>
    tpu.vector_store %arg5[%c0_21, %c0_22], %51 {strides = array<i32>} : memref<128x8xf32, #tpu.memory_space<vmem>>, vector<128x8xf32>,
    return
  }
  func.func @transform_0(%arg0: i32) -> (i32, i32) {
    %c0_i32 = arith.constant 0 : i32
    %c0_i32_0 = arith.constant 0 : i32
    return %arg0, %c0_i32 : i32, i32
  }
  func.func @transform_1(%arg0: i32) -> (i32, i32) {
    %c0_i32 = arith.constant 0 : i32
    %c0_i32_0 = arith.constant 0 : i32
    %c0_i32_1 = arith.constant 0 : i32
    return %c0_i32, %c0_i32_0 : i32, i32
  }
  func.func @transform_2(%arg0: i32) -> (i32, i32) {
    %c0_i32 = arith.constant 0 : i32
    %c0_i32_0 = arith.constant 0 : i32
    %c0_i32_1 = arith.constant 0 : i32
    return %c0_i32, %c0_i32_0 : i32, i32
  }
  func.func @transform_3(%arg0: i32) -> (i32, i32) {
    %c0_i32 = arith.constant 0 : i32
    %c0_i32_0 = arith.constant 0 : i32
    %c0_i32_1 = arith.constant 0 : i32
    return %c0_i32, %c0_i32_0 : i32, i32
  }
  func.func @transform_4(%arg0: i32) -> (i32, i32) {
    %c0_i32 = arith.constant 0 : i32
    %c0_i32_0 = arith.constant 0 : i32
    return %arg0, %c0_i32 : i32, i32
  }
}

</mosaic_0001>

<bundles_post_ra>
// kernel: tpu_custom_call.1
= control target key start
LH: loop header
LB: loop body
LE: loop exit
PB: predicated region body
PF: predicated region fallthrough
CT: control target
= control target key end

     0   :  { %s2029_s15 = smov 0   ;;  %s2402_s0 = inlined_call_operand.vmem [shape: bf16[1024,16], index: 0, kind: input, shape index: {}]   ;;  %s2403_s1 = inlined_call_operand.vmem [shape: bf16[16,128], index: 1, kind: input, shape index: {}]   ;;  %s2404_s2 = inlined_call_operand.vmem [shape: bf16[640,128], index: 2, kind: input, shape index: {}]   ;;  %s2405_s3 = inlined_call_operand.vmem [shape: f32[8,128], index: 3, kind: input, shape index: {}]   ;;  %s2406_s4 = inlined_call_operand.vmem [shape: f32[1024,8], index: 4, kind: output, shape index: {}]  }
   0x1 LB: > { %s1507_s16 = sadd.s32 4294967295, %s2002_s15   ;;  %p1511_p0 = scmp.ge.s32.totalorder %s2002_s15, 1  ;;  %s2002_s15 = sphi %s2029_s15, %s14_s15  }
   0x2   : > { %p163_p1 = scmp.lt.s32.totalorder %s2002_s15, 9 }
   0x4   : > { %p164_p2 = pnand %p1511_p0, %p163_p1 }
   0x5   : > { %v1882_v0 = vld [vmem:[%s2403_s1] sm:$0xff] (!%p164_p2)   ;;  %s1512_s19 = sshll.u32 (!%p164_p2), %s1507_s16, 4  ;;  %v1892_v2 = vld [vmem:[%s2404_s2 + $0x8] sm:$0xff] (!%p164_p2)   ;;  %vm271_vm0 = vcmask (!%p164_p2), 130048   ;;  %v1893_v3 = vld [vmem:[%s2404_s2 + $0x10] sm:$0xff] (!%p164_p2)   ;;  %v221_v23 = vlaneseq (!%p164_p2)  ;;  %vm1434_vm1 = vcmask (!%p164_p2), 64512  }
   0x6   : > { %167 = sbr.rel (%p164_p2) target bundleno = 1397 (0x575), region = 36  ;;  %p190_p3 = scmp.lt.s32.totalorder (!%p164_p2), %s1512_s19, 127  ;;  %1680 = vmatprep.subr.bf16.mxu0 (!%p164_p2), %v1882_v0  ;;  %v1891_v1 = vld [vmem:[%s2404_s2] sm:$0xff] (!%p164_p2)   ;;  %v1894_v7 = vld [vmem:[%s2404_s2 + $0x18] sm:$0xff] (!%p164_p2)   ;;  %v1896_v11 = vld [vmem:[%s2404_s2 + $0x28] sm:$0xff] (!%p164_p2)  }
   0x7   : > { %1681 = vmatpush3.bf16.msra.mxu0 (!%p164_p2), %v1882_v0  ;;  %1698 = vmatprep.subr.bf16.mxu1 (!%p164_p2), %v1891_v1  ;;  %v1895_v8 = vld [vmem:[%s2404_s2 + $0x20] sm:$0xff] (!%p164_p2)   ;;  %v1897_v15 = vld [vmem:[%s2404_s2 + $0x30] sm:$0xff] (!%p164_p2)   ;;  %v1898_v16 = vld [vmem:[%s2404_s2 + $0x38] sm:$0xff] (!%p164_p2)   ;;  %v2096_v24 = vshrl.u32 (!%p164_p2), %v221_v23, 7 }
   0x8   : > { %1699 = vmatpush3.bf16.msra.mxu1 (!%p164_p2), %v1891_v1  ;;  %v1899_v17 = vld [vmem:[%s2404_s2 + $0x40] sm:$0xff] (!%p164_p2)   ;;  %v1900_v18 = vld [vmem:[%s2404_s2 + $0x48] sm:$0xff] (!%p164_p2)   ;;  %v1901_v19 = vld [vmem:[%s2404_s2 + $0x50] sm:$0xff] (!%p164_p2)  }
   0x9   : > { %1700 = vmatprep.subr.bf16.mxu1 (!%p164_p2), %v1892_v2  ;;  %1730 = vmatprep.subr.bf16.mxu0 (!%p164_p2), %v1899_v17  ;;  %v1902_v20 = vld [vmem:[%s2404_s2 + $0x58] sm:$0xff] (!%p164_p2)   ;;  %v1903_v21 = vld [vmem:[%s2404_s2 + $0x60] sm:$0xff] (!%p164_p2)   ;;  %v1904_v22 = vld [vmem:[%s2404_s2 + $0x68] sm:$0xff] (!%p164_p2)   ;;  %v223_v25 = vsub.s32 (!%p164_p2), 0, %v2096_v24 }
   0xa   : > { %v2102_v26 = vld [vmem:[%s2405_s3] sm:$0xff] (!%p164_p2) }
   0xb   : > { %v224_v27 = vrot.slane (!%p164_p2), %v2102_v26, %v223_v25 }
   0xc   : > { %1701 = vmatpush3.bf16.msra.mxu1 (!%p164_p2), %v1892_v2 }
   0xd   : > { %s2408_s19 = smov (!%p190_p3, %s1512_s19), 127  ;;  %1702 = vmatprep.subr.bf16.mxu1 %v1893_v3 }
   0xe   : > { %s1513_s24 = sshll.u32 %s2408_s19, 2  ;;  %s1515_s8 = sshll.u32 %s2408_s19, 3 }
   0xf   : > { %s193_s27 = scalar_lea.vmem %s2402_s0, %s1513_s24  ;;  %s2365_s13 = scalar_lea.vmem %s2406_s4, %s1515_s8 }
  0x10   : > { %v1883_v4 = vld [vmem:[%s193_s27] sm:$0xff]   ;;  %v1884_v5 = vld [vmem:[%s193_s27 + $0x8] sm:$0xff]   ;;  %v1885_v6 = vld [vmem:[%s193_s27 + $0x10] sm:$0xff]   ;;  %1703 = vmatpush3.bf16.msra.mxu1 %v1893_v3 }
  0x11   : > { %1682 = vmatprep.mubr.msk.bf16.mxu0 %vm271_vm0, %v1883_v4  ;;  %v1886_v9 = vld [vmem:[%s193_s27 + $0x18] sm:$0xff]   ;;  %1704 = vmatprep.subr.bf16.mxu1 %v1894_v7  ;;  %v1887_v10 = vld [vmem:[%s193_s27 + $0x20] sm:$0xff]   ;;  %v1888_v12 = vld [vmem:[%s193_s27 + $0x28] sm:$0xff]  }
  0x12   : > { %1683 = vmatmul.mubr.msk.bf16.vlgmr.msra.gmra.mrb[0].mxu0 %vm271_vm0, %v1884_v5  ;;  %v1889_v13 = vld [vmem:[%s193_s27 + $0x30] sm:$0xff]   ;;  %v1890_v14 = vld [vmem:[%s193_s27 + $0x38] sm:$0xff]  }
  0x13   : > { %1686 = vmatprep.mubr.msk.bf16.mxu0 %vm271_vm0, %v1885_v6  ;;  %1731 = vmatpush3.bf16.msra.mxu0 %v1899_v17 }
  0x14   : > { %1705 = vmatpush3.bf16.msra.mxu1 %v1894_v7  ;;  %1732 = vmatprep.subr.bf16.mxu0 %v1900_v18 }
  0x15   : > { %1706 = vmatprep.subr.bf16.mxu1 %v1895_v8 }
  0x17   : > { %1733 = vmatpush3.bf16.msra.mxu0 %v1900_v18 }
  0x18   : > { %1707 = vmatpush3.bf16.msra.mxu1 %v1895_v8  ;;  %1734 = vmatprep.subr.bf16.mxu0 %v1901_v19 }
  0x19   : > { %1708 = vmatprep.subr.bf16.mxu1 %v1896_v11 }
  0x1a   : > { %1687 = vmatmul.mubr.msk.bf16.gmra.mrb[4].mxu0 %vm271_vm0, %v1886_v9 }
  0x1b   : > { %1690 = vmatprep.mubr.msk.bf16.mxu0 %vm271_vm0, %v1887_v10  ;;  %1735 = vmatpush3.bf16.msra.mxu0 %v1901_v19 }
  0x1c   : > { %1709 = vmatpush3.bf16.msra.mxu1 %v1896_v11  ;;  %1736 = vmatprep.subr.bf16.mxu0 %v1902_v20 }
  0x1d   : > { %1710 = vmatprep.subr.bf16.mxu1 %v1897_v15 }
  0x1f   : > { %1737 = vmatpush3.bf16.msra.mxu0 %v1902_v20  ;;  %v1905_v20 = vld [vmem:[%s2404_s2 + $0x70] sm:$0xff]  }
  0x20   : > { %1711 = vmatpush3.bf16.msra.mxu1 %v1897_v15  ;;  %1738 = vmatprep.subr.bf16.mxu0 %v1903_v21 }
  0x21   : > { %1712 = vmatprep.subr.bf16.mxu1 %v1898_v16 }
  0x22   : > { %1691 = vmatmul.mubr.msk.bf16.gmra.mrb[8].mxu0 %vm271_vm0, %v1888_v12 }
  0x23   : > { %1694 = vmatprep.mubr.msk.bf16.mxu0 %vm271_vm0, %v1889_v13  ;;  %1739 = vmatpush3.bf16.msra.mxu0 %v1903_v21  ;;  %v1906_v21 = vld [vmem:[%s2404_s2 + $0x78] sm:$0xff]  }
  0x24   : > { %1713 = vmatpush3.bf16.msra.mxu1 %v1898_v16  ;;  %1740 = vmatprep.subr.bf16.mxu0 %v1904_v22 }
  0x27   : > { %1741 = vmatpush3.bf16.msra.mxu0 %v1904_v22  ;;  %v435_v22 = vsub.s32 1, %v2096_v24 }
  0x28   : > { %1742 = vmatprep.subr.bf16.mxu0 %v1905_v20 }
  0x29   : > { %v436_v23 = vrot.slane %v2102_v26, %v435_v22  ;;  %v1911_v22 = vld [vmem:[%s2404_s2 + $0xa0] sm:$0xff]  }
  0x2a   : > { %1695 = vmatmul.mubr.msk.bf16.gmra.mrb[12].mxu0 %vm271_vm0, %v1890_v14 }
  0x2b   : > { %1743 = vmatpush3.bf16.msra.mxu0 %v1905_v20  ;;  %v1909_v20 = vld [vmem:[%s2404_s2 + $0x90] sm:$0xff]  }
  0x2c   : > { %1744 = vmatprep.subr.bf16.mxu0 %v1906_v21 }
  0x2f   : > { %1745 = vmatpush3.bf16.msra.mxu0 %v1906_v21  ;;  %v1910_v21 = vld [vmem:[%s2404_s2 + $0x98] sm:$0xff]  }
  0xe5   : > { %v1684_v28 = vpop.f32.mrb[0].mxu0 }
  0xe6   : > { %v339_v29 = vadd.f32 %v1684_v28, %v224_v27  ;;  %v330_v30 = vpop.f32.mrb[1].mxu0 }
  0xe7   : > { %v331_v31 = vadd.f32 %v330_v30, %v224_v27  ;;  %v1685_v32 = vpop.f32.mrb[2].mxu0 }
  0xe8   : > { %v342_v33 = vadd.f32 %v1685_v32, %v224_v27  ;;  %v333_v34 = vpop.f32.mrb[3].mxu0  ;;  %v395_v36 = vmax.f32 %v339_v29, 0.0 }
  0xe9   : > { %v334_v35 = vadd.f32 %v333_v34, %v224_v27  ;;  %v393_v38 = vmax.f32 %v331_v31, 0.0 }
  0xea   : > { %v396_v37 = vmax.f32 %v342_v33, 0.0 }
  0xeb   : > { %v394_v39 = vmax.f32 %v334_v35, 0.0 }
  0xec   : > { %v426_v40 = vpack.c.bf16 %v396_v37, %v395_v36 }
  0xed   : > { %v1688_v41 = vpop.f32.mrb[4].mxu0  ;;  %v425_v42 = vpack.c.bf16 %v394_v39, %v393_v38 }
  0xee   : > { %v355_v43 = vadd.f32 %v1688_v41, %v224_v27  ;;  %v346_v44 = vpop.f32.mrb[5].mxu0 }
  0xef   : > { %v347_v45 = vadd.f32 %v346_v44, %v224_v27  ;;  %v1689_v46 = vpop.f32.mrb[6].mxu0  ;;  %1714 = vmatprep.mubr.bf16.mxu1 %v425_v42 }
  0xf0   : > { %v358_v47 = vadd.f32 %v1689_v46, %v224_v27  ;;  %v349_v48 = vpop.f32.mrb[7].mxu0  ;;  %1715 = vmatmul.mubr.bf16.vlgmr.msra.gmra.mrb[0].mxu1 %v426_v40  ;;  %v399_v50 = vmax.f32 %v355_v43, 0.0 }
  0xf1   : > { %v350_v49 = vadd.f32 %v349_v48, %v224_v27  ;;  %v397_v52 = vmax.f32 %v347_v45, 0.0 }
  0xf2   : > { %v400_v51 = vmax.f32 %v358_v47, 0.0 }
  0xf3   : > { %v398_v53 = vmax.f32 %v350_v49, 0.0 }
  0xf4   : > { %v428_v54 = vpack.c.bf16 %v400_v51, %v399_v50 }
  0xf5   : > { %v427_v55 = vpack.c.bf16 %v398_v53, %v397_v52  ;;  %v1692_v56 = vpop.f32.mrb[8].mxu0 }
  0xf6   : > { %v371_v57 = vadd.f32 %v1692_v56, %v224_v27  ;;  %v362_v58 = vpop.f32.mrb[9].mxu0 }
  0xf7   : > { %v363_v59 = vadd.f32 %v362_v58, %v224_v27  ;;  %v1693_v60 = vpop.f32.mrb[10].mxu0  ;;  %1718 = vmatprep.mubr.bf16.mxu1 %v427_v55 }
  0xf8   : > { %v374_v61 = vadd.f32 %v1693_v60, %v224_v27  ;;  %v365_v62 = vpop.f32.mrb[11].mxu0  ;;  %1719 = vmatmul.mubr.bf16.gmra.mrb[4].mxu1 %v428_v54  ;;  %v403_v0 = vmax.f32 %v371_v57, 0.0 }
  0xf9   : > { %v366_v63 = vadd.f32 %v365_v62, %v224_v27  ;;  %v401_v2 = vmax.f32 %v363_v59, 0.0 }
  0xfa   : > { %v404_v1 = vmax.f32 %v374_v61, 0.0 }
  0xfb   : > { %v402_v3 = vmax.f32 %v366_v63, 0.0 }
  0xfc   : > { %v430_v4 = vpack.c.bf16 %v404_v1, %v403_v0 }
  0xfd   : > { %v429_v5 = vpack.c.bf16 %v402_v3, %v401_v2  ;;  %v1696_v6 = vpop.f32.mrb[12].mxu0 }
  0xfe   : > { %v387_v7 = vadd.f32 %v1696_v6, %v224_v27  ;;  %v378_v8 = vpop.f32.mrb[13].mxu0 }
  0xff   : > { %v379_v9 = vadd.f32 %v378_v8, %v224_v27  ;;  %v1697_v10 = vpop.f32.mrb[14].mxu0  ;;  %1722 = vmatprep.mubr.bf16.mxu1 %v429_v5 }
 0x100   : > { %v390_v11 = vadd.f32 %v1697_v10, %v224_v27  ;;  %v381_v12 = vpop.f32.mrb[15].mxu0  ;;  %1723 = vmatmul.mubr.bf16.gmra.mrb[8].mxu1 %v430_v4  ;;  %v407_v14 = vmax.f32 %v387_v7, 0.0 }
 0x101   : > { %v382_v13 = vadd.f32 %v381_v12, %v224_v27  ;;  %v405_v16 = vmax.f32 %v379_v9, 0.0 }
 0x102   : > { %v408_v15 = vmax.f32 %v390_v11, 0.0 }
 0x103   : > { %v406_v17 = vmax.f32 %v382_v13, 0.0 }
 0x104   : > { %v432_v18 = vpack.c.bf16 %v408_v15, %v407_v14 }
 0x105   : > { %v431_v19 = vpack.c.bf16 %v406_v17, %v405_v16 }
 0x107   : > { %1726 = vmatprep.mubr.bf16.mxu1 %v431_v19  ;;  %v1908_v19 = vld [vmem:[%s2404_s2 + $0x88] sm:$0xff]  }
 0x108   : > { %1727 = vmatmul.mubr.bf16.gmra.mrb[12].mxu1 %v432_v18  ;;  %v1907_v18 = vld [vmem:[%s2404_s2 + $0x80] sm:$0xff]  }
 0x109   : > { %1762 = vmatprep.subr.bf16.mxu1 %v1907_v18 }
 0x10a   : > { %1763 = vmatpush3.bf16.msra.mxu1 %v1907_v18 }
 0x10b   : > { %1764 = vmatprep.subr.bf16.mxu1 %v1908_v19 }
 0x10e   : > { %1765 = vmatpush3.bf16.msra.mxu1 %v1908_v19 }
 0x10f   : > { %1766 = vmatprep.subr.bf16.mxu1 %v1909_v20 }
 0x112   : > { %1767 = vmatpush3.bf16.msra.mxu1 %v1909_v20 }
 0x113   : > { %1768 = vmatprep.subr.bf16.mxu1 %v1910_v21 }
 0x116   : > { %1769 = vmatpush3.bf16.msra.mxu1 %v1910_v21 }
 0x117   : > { %1770 = vmatprep.subr.bf16.mxu1 %v1911_v22 }
 0x11a   : > { %1771 = vmatpush3.bf16.msra.mxu1 %v1911_v22 }
 0x1c3   : > { %v1716_v25 = vpop.f32.mrb[0].mxu1 }
 0x1c4   : > { %v519_v27 = vpop.f32.mrb[1].mxu1  ;;  %v2115_v30 = vadd.f32 %v1716_v25, %v436_v23  ;;  %v1913_v25 = vld [vmem:[%s2404_s2 + $0xb0] sm:$0xff]  }
 0x1c5   : > { %v2113_v28 = vadd.f32 %v519_v27, %v436_v23  ;;  %v1717_v29 = vpop.f32.mrb[2].mxu1  ;;  %v1914_v27 = vld [vmem:[%s2404_s2 + $0xb8] sm:$0xff]  }
 0x1c6   : > { %v2117_v31 = vadd.f32 %v1717_v29, %v436_v23  ;;  %v522_v32 = vpop.f32.mrb[3].mxu1  ;;  %v584_v37 = vmax.f32 %v2115_v30, 0.0  ;;  %v1915_v29 = vld [vmem:[%s2404_s2 + $0xc0] sm:$0xff]  }
 0x1c7   : > { %v2119_v33 = vadd.f32 %v522_v32, %v436_v23  ;;  %v582_v35 = vmax.f32 %v2113_v28, 0.0  ;;  %v1916_v32 = vld [vmem:[%s2404_s2 + $0xc8] sm:$0xff]   ;;  %1794 = vmatprep.subr.bf16.mxu0 %v1915_v29 }
 0x1c8   : > { %v585_v34 = vmax.f32 %v2117_v31, 0.0 }
 0x1c9   : > { %v583_v36 = vmax.f32 %v2119_v33, 0.0 }
 0x1ca   : > { %v615_v40 = vpack.c.bf16 %v585_v34, %v584_v37 }
 0x1cb   : > { %v614_v38 = vpack.c.bf16 %v583_v36, %v582_v35  ;;  %v1720_v39 = vpop.f32.mrb[4].mxu1 }
 0x1cc   : > { %v535_v41 = vpop.f32.mrb[5].mxu1  ;;  %v2135_v44 = vadd.f32 %v1720_v39, %v436_v23  ;;  %v1918_v39 = vld [vmem:[%s2404_s2 + $0xd8] sm:$0xff]  }
 0x1cd   : > { %v2133_v42 = vadd.f32 %v535_v41, %v436_v23  ;;  %v1721_v43 = vpop.f32.mrb[6].mxu1  ;;  %1746 = vmatprep.mubr.bf16.mxu0 %v614_v38  ;;  %v1917_v38 = vld [vmem:[%s2404_s2 + $0xd0] sm:$0xff]   ;;  %v1920_v41 = vld [vmem:[%s2404_s2 + $0xe8] sm:$0xff]  }
 0x1ce   : > { %v2137_v45 = vadd.f32 %v1721_v43, %v436_v23  ;;  %v538_v46 = vpop.f32.mrb[7].mxu1  ;;  %1747 = vmatmul.mubr.bf16.vlgmr.msra.gmra.mrb[16].mxu0 %v615_v40  ;;  %v588_v51 = vmax.f32 %v2135_v44, 0.0  ;;  %v1919_v40 = vld [vmem:[%s2404_s2 + $0xe0] sm:$0xff]   ;;  %v624_v43 = vsub.s32 2, %v2096_v24 }
 0x1cf   : > { %v2139_v47 = vadd.f32 %v538_v46, %v436_v23  ;;  %v586_v49 = vmax.f32 %v2133_v42, 0.0  ;;  %1795 = vmatpush3.bf16.msra.mxu0 %v1915_v29 }
 0x1d0   : > { %v589_v48 = vmax.f32 %v2137_v45, 0.0  ;;  %1796 = vmatprep.subr.bf16.mxu0 %v1916_v32  ;;  %v2237_v46 = vrot.slane %v2102_v26, %v624_v43 }
 0x1d1   : > { %v587_v50 = vmax.f32 %v2139_v47, 0.0 }
 0x1d2   : > { %v617_v54 = vpack.c.bf16 %v589_v48, %v588_v51 }
 0x1d3   : > { %v616_v52 = vpack.c.bf16 %v587_v50, %v586_v49  ;;  %v1724_v53 = vpop.f32.mrb[8].mxu1  ;;  %1797 = vmatpush3.bf16.msra.mxu0 %v1916_v32 }
 0x1d4   : > { %v551_v55 = vpop.f32.mrb[9].mxu1  ;;  %v2155_v58 = vadd.f32 %v1724_v53, %v436_v23  ;;  %1798 = vmatprep.subr.bf16.mxu0 %v1917_v38 }
 0x1d5   : > { %v2153_v56 = vadd.f32 %v551_v55, %v436_v23  ;;  %v1725_v57 = vpop.f32.mrb[10].mxu1  ;;  %1750 = vmatprep.mubr.bf16.mxu0 %v616_v52 }
 0x1d6   : > { %v2157_v59 = vadd.f32 %v1725_v57, %v436_v23  ;;  %v554_v60 = vpop.f32.mrb[11].mxu1  ;;  %1751 = vmatmul.mubr.bf16.gmra.mrb[20].mxu0 %v617_v54  ;;  %v592_v1 = vmax.f32 %v2155_v58, 0.0 }
 0x1d7   : > { %v2159_v61 = vadd.f32 %v554_v60, %v436_v23  ;;  %v590_v63 = vmax.f32 %v2153_v56, 0.0  ;;  %1799 = vmatpush3.bf16.msra.mxu0 %v1917_v38 }
 0x1d8   : > { %v593_v62 = vmax.f32 %v2157_v59, 0.0  ;;  %1800 = vmatprep.subr.bf16.mxu0 %v1918_v39 }
 0x1d9   : > { %v591_v0 = vmax.f32 %v2159_v61, 0.0 }
 0x1da   : > { %v619_v4 = vpack.c.bf16 %v593_v62, %v592_v1 }
 0x1db   : > { %v618_v2 = vpack.c.bf16 %v591_v0, %v590_v63  ;;  %v1728_v3 = vpop.f32.mrb[12].mxu1  ;;  %1801 = vmatpush3.bf16.msra.mxu0 %v1918_v39 }
 0x1dc   : > { %v567_v5 = vpop.f32.mrb[13].mxu1  ;;  %v2175_v8 = vadd.f32 %v1728_v3, %v436_v23  ;;  %1802 = vmatprep.subr.bf16.mxu0 %v1919_v40 }
 0x1dd   : > { %v2173_v6 = vadd.f32 %v567_v5, %v436_v23  ;;  %v1729_v7 = vpop.f32.mrb[14].mxu1  ;;  %1754 = vmatprep.mubr.bf16.mxu0 %v618_v2 }
 0x1de   : > { %v2177_v9 = vadd.f32 %v1729_v7, %v436_v23  ;;  %v570_v10 = vpop.f32.mrb[15].mxu1  ;;  %1755 = vmatmul.mubr.bf16.gmra.mrb[24].mxu0 %v619_v4  ;;  %v596_v15 = vmax.f32 %v2175_v8, 0.0  ;;  %v1924_v8 = vld [vmem:[%s2404_s2 + $0x108] sm:$0xff]  }
 0x1df   : > { %v2179_v11 = vadd.f32 %v570_v10, %v436_v23  ;;  %v594_v13 = vmax.f32 %v2173_v6, 0.0  ;;  %v1912_v23 = vld [vmem:[%s2404_s2 + $0xa8] sm:$0xff]   ;;  %1803 = vmatpush3.bf16.msra.mxu0 %v1919_v40  ;;  %v1923_v6 = vld [vmem:[%s2404_s2 + $0x100] sm:$0xff]  }
 0x1e0   : > { %v597_v12 = vmax.f32 %v2177_v9, 0.0  ;;  %1772 = vmatprep.subr.bf16.mxu1 %v1912_v23  ;;  %1804 = vmatprep.subr.bf16.mxu0 %v1920_v41  ;;  %v1925_v9 = vld [vmem:[%s2404_s2 + $0x110] sm:$0xff]  }
 0x1e1   : > { %v595_v14 = vmax.f32 %v2179_v11, 0.0  ;;  %1773 = vmatpush3.bf16.msra.mxu1 %v1912_v23  ;;  %v2305_v11 = vld [vmem:[%s2404_s2 + $0x118] sm:$0xff]  }
 0x1e2   : > { %v621_v17 = vpack.c.bf16 %v597_v12, %v596_v15  ;;  %1774 = vmatprep.subr.bf16.mxu1 %v1913_v25 }
 0x1e3   : > { %v620_v16 = vpack.c.bf16 %v595_v14, %v594_v13  ;;  %1805 = vmatpush3.bf16.msra.mxu0 %v1920_v41 }
 0x1e5   : > { %1758 = vmatprep.mubr.bf16.mxu0 %v620_v16  ;;  %1775 = vmatpush3.bf16.msra.mxu1 %v1913_v25 }
 0x1e6   : > { %1759 = vmatmul.mubr.bf16.gmra.mrb[28].mxu0 %v621_v17  ;;  %1776 = vmatprep.subr.bf16.mxu1 %v1914_v27 }
 0x1e9   : > { %1777 = vmatpush3.bf16.msra.mxu1 %v1914_v27 }
 0x1ea   : > { %1858 = vmatprep.subr.bf16.mxu1 %v1923_v6 }
 0x2a1   : > { %v1748_v52 = vpop.f32.mrb[16].mxu0 }
 0x2a2   : > { %v717_v53 = vadd.f32 %v1748_v52, %v2237_v46  ;;  %v708_v54 = vpop.f32.mrb[17].mxu0 }
 0x2a3   : > { %v709_v55 = vadd.f32 %v708_v54, %v2237_v46  ;;  %v1749_v57 = vpop.f32.mrb[18].mxu0 }
 0x2a4   : > { %v1551_v60 = vmul.f32 -1.442695, %v717_v53  ;;  %v720_v2 = vadd.f32 %v1749_v57, %v2237_v46  ;;  %v711_v3 = vpop.f32.mrb[19].mxu0 }
 0x2a5   : > { %v1549_v4 = vmul.f32 -1.442695, %v709_v55  ;;  %v712_v5 = vadd.f32 %v711_v3, %v2237_v46 }
 0x2a6   : > { %1931 = vpow2.f32 %v1551_v60  ;;  %v1552_v7 = vmul.f32 -1.442695, %v720_v2 }
 0x2a7   : > { %1933 = vpow2.f32 %v1549_v4  ;;  %v1550_v10 = vmul.f32 -1.442695, %v712_v5 }
 0x2a8   : > { %1935 = vpow2.f32 %v1552_v7 }
 0x2a9   : > { %1937 = vpow2.f32 %v1550_v10  ;;  %v1752_v16 = vpop.f32.mrb[20].mxu0 }
 0x2aa   : > { %v733_v17 = vadd.f32 %v1752_v16, %v2237_v46  ;;  %v724_v18 = vpop.f32.mrb[21].mxu0 }
 0x2ab   : > { %v725_v19 = vadd.f32 %v724_v18, %v2237_v46  ;;  %v1753_v20 = vpop.f32.mrb[22].mxu0 }
 0x2ac   : > { %v1555_v21 = vmul.f32 -1.442695, %v733_v17  ;;  %v736_v22 = vadd.f32 %v1753_v20, %v2237_v46  ;;  %v727_v23 = vpop.f32.mrb[23].mxu0 }
 0x2ad   : > { %v1553_v25 = vmul.f32 -1.442695, %v725_v19  ;;  %v728_v27 = vadd.f32 %v727_v23, %v2237_v46 }
 0x2ae   : > { %1939 = vpow2.f32 %v1555_v21  ;;  %v1556_v29 = vmul.f32 -1.442695, %v736_v22 }
 0x2af   : > { %1941 = vpow2.f32 %v1553_v25  ;;  %v1554_v32 = vmul.f32 -1.442695, %v728_v27 }
 0x2b0   : > { %v1932_v38 = vpop.eup %1931  ;;  %1943 = vpow2.f32 %v1556_v29 }
 0x2b1   : > { %v1934_v39 = vpop.eup %1933  ;;  %v821_v40 = vadd.f32 1.0, %v1932_v38  ;;  %1945 = vpow2.f32 %v1554_v32  ;;  %v1756_v41 = vpop.f32.mrb[24].mxu0 }
 0x2b2   : > { %v1936_v43 = vpop.eup %1935  ;;  %v819_v52 = vadd.f32 1.0, %v1934_v39  ;;  %v749_v53 = vadd.f32 %v1756_v41, %v2237_v46  ;;  %v740_v54 = vpop.f32.mrb[25].mxu0 }
 0x2b3   : > { %v1938_v55 = vpop.eup %1937  ;;  %1947 = vrcp.f32 %v821_v40  ;;  %v822_v57 = vadd.f32 1.0, %v1936_v43  ;;  %v741_v60 = vadd.f32 %v740_v54, %v2237_v46  ;;  %v1757_v2 = vpop.f32.mrb[26].mxu0 }
 0x2b4   : > { %1949 = vrcp.f32 %v819_v52  ;;  %v820_v3 = vadd.f32 1.0, %v1938_v55  ;;  %v1559_v4 = vmul.f32 -1.442695, %v749_v53  ;;  %v752_v5 = vadd.f32 %v1757_v2, %v2237_v46  ;;  %v743_v7 = vpop.f32.mrb[27].mxu0 }
 0x2b5   : > { %1951 = vrcp.f32 %v822_v57  ;;  %v1557_v10 = vmul.f32 -1.442695, %v741_v60  ;;  %v744_v16 = vadd.f32 %v743_v7, %v2237_v46 }
 0x2b6   : > { %1953 = vrcp.f32 %v820_v3  ;;  %v1560_v17 = vmul.f32 -1.442695, %v752_v5 }
 0x2b7   : > { %1955 = vpow2.f32 %v1559_v4  ;;  %v1558_v18 = vmul.f32 -1.442695, %v744_v16 }
 0x2b8   : > { %v1940_v19 = vpop.eup %1939  ;;  %1957 = vpow2.f32 %v1557_v10 }
 0x2b9   : > { %v1942_v20 = vpop.eup %1941  ;;  %v825_v21 = vadd.f32 1.0, %v1940_v19  ;;  %1959 = vpow2.f32 %v1560_v17  ;;  %v1760_v22 = vpop.f32.mrb[28].mxu0 }
 0x2ba   : > { %v1944_v23 = vpop.eup %1943  ;;  %v823_v25 = vadd.f32 1.0, %v1942_v20  ;;  %1961 = vpow2.f32 %v1558_v18  ;;  %v765_v27 = vadd.f32 %v1760_v22, %v2237_v46  ;;  %v756_v29 = vpop.f32.mrb[29].mxu0 }
 0x2bb   : > { %v1946_v32 = vpop.eup %1945  ;;  %1963 = vrcp.f32 %v825_v21  ;;  %v826_v38 = vadd.f32 1.0, %v1944_v23  ;;  %v757_v39 = vadd.f32 %v756_v29, %v2237_v46  ;;  %v1761_v40 = vpop.f32.mrb[30].mxu0 }
 0x2bc   : > { %1965 = vrcp.f32 %v823_v25  ;;  %v824_v41 = vadd.f32 1.0, %v1946_v32  ;;  %v1563_v43 = vmul.f32 -1.442695, %v765_v27  ;;  %v768_v52 = vadd.f32 %v1761_v40, %v2237_v46  ;;  %v759_v53 = vpop.f32.mrb[31].mxu0 }
 0x2bd   : > { %v1948_v54 = vpop.eup %1947  ;;  %1967 = vrcp.f32 %v826_v38  ;;  %v1561_v55 = vmul.f32 -1.442695, %v757_v39  ;;  %v760_v57 = vadd.f32 %v759_v53, %v2237_v46 }
 0x2be   : > { %v1950_v60 = vpop.eup %1949  ;;  %1969 = vrcp.f32 %v824_v41  ;;  %v1564_v2 = vmul.f32 -1.442695, %v768_v52  ;;  %v869_v7 = vmul.f32 %v1948_v54, %v584_v37 }
 0x2bf   : > { %v1952_v3 = vpop.eup %1951  ;;  %1971 = vpow2.f32 %v1563_v43  ;;  %v1562_v4 = vmul.f32 -1.442695, %v760_v57  ;;  %v867_v17 = vmul.f32 %v1950_v60, %v582_v35 }
 0x2c0   : > { %v1954_v5 = vpop.eup %1953  ;;  %1973 = vpow2.f32 %v1561_v55  ;;  %v870_v10 = vmul.f32 %v1952_v3, %v585_v34 }
 0x2c1   : > { %v1956_v16 = vpop.eup %1955  ;;  %1975 = vpow2.f32 %v1564_v2  ;;  %v868_v46 = vmul.f32 %v1954_v5, %v583_v36 }
 0x2c2   : > { %v1958_v18 = vpop.eup %1957  ;;  %v829_v19 = vadd.f32 1.0, %v1956_v16  ;;  %1977 = vpow2.f32 %v1562_v4  ;;  %v900_v20 = vpack.c.bf16 %v870_v10, %v869_v7 }
 0x2c3   : > { %v1960_v21 = vpop.eup %1959  ;;  %v827_v22 = vadd.f32 1.0, %v1958_v18  ;;  %v899_v23 = vpack.c.bf16 %v868_v46, %v867_v17 }
 0x2c4   : > { %v1962_v30 = vpop.eup %1961  ;;  %1979 = vrcp.f32 %v829_v19  ;;  %v830_v37 = vadd.f32 1.0, %v1960_v21 }
 0x2c5   : > { %v1964_v31 = vpop.eup %1963  ;;  %1981 = vrcp.f32 %v827_v22  ;;  %v828_v34 = vadd.f32 1.0, %v1962_v30  ;;  %1778 = vmatprep.mubr.bf16.mxu1 %v899_v23 }
 0x2c6   : > { %v1966_v25 = vpop.eup %1965  ;;  %1983 = vrcp.f32 %v830_v37  ;;  %1779 = vmatmul.mubr.bf16.vlgmr.msra.gmra.mrb[16].mxu1 %v900_v20  ;;  %v873_v35 = vmul.f32 %v1964_v31, %v588_v51 }
 0x2c7   : > { %v1968_v28 = vpop.eup %1967  ;;  %1985 = vrcp.f32 %v828_v34  ;;  %v871_v29 = vmul.f32 %v1966_v25, %v586_v49  ;;  %1866 = vmatpush3.bf16.msra.mxu1 %v1923_v6 }
 0x2c8   : > { %v1970_v33 = vpop.eup %1969  ;;  %v874_v36 = vmul.f32 %v1968_v28, %v589_v48  ;;  %1859 = vmatprep.subr.bf16.mxu1 %v1924_v8 }
 0x2c9   : > { %v1972_v27 = vpop.eup %1971  ;;  %v872_v32 = vmul.f32 %v1970_v33, %v587_v50 }
 0x2ca   : > { %v1974_v38 = vpop.eup %1973  ;;  %v833_v39 = vadd.f32 1.0, %v1972_v27  ;;  %v902_v40 = vpack.c.bf16 %v874_v36, %v873_v35 }
 0x2cb   : > { %v1976_v41 = vpop.eup %1975  ;;  %v831_v43 = vadd.f32 1.0, %v1974_v38  ;;  %v901_v52 = vpack.c.bf16 %v872_v32, %v871_v29  ;;  %1867 = vmatpush3.bf16.msra.mxu1 %v1924_v8 }
 0x2cc   : > { %v1978_v53 = vpop.eup %1977  ;;  %1987 = vrcp.f32 %v833_v39  ;;  %v834_v44 = vadd.f32 1.0, %v1976_v41  ;;  %1860 = vmatprep.subr.bf16.mxu1 %v1925_v9 }
 0x2cd   : > { %1989 = vrcp.f32 %v831_v43  ;;  %v832_v51 = vadd.f32 1.0, %v1978_v53  ;;  %1782 = vmatprep.mubr.bf16.mxu1 %v901_v52 }
 0x2ce   : > { %v1980_v45 = vpop.eup %1979  ;;  %1991 = vrcp.f32 %v834_v44  ;;  %1783 = vmatmul.mubr.bf16.gmra.mrb[20].mxu1 %v902_v40 }
 0x2cf   : > { %v1982_v42 = vpop.eup %1981  ;;  %1993 = vrcp.f32 %v832_v51  ;;  %v877_v49 = vmul.f32 %v1980_v45, %v592_v1  ;;  %v1922_v1 = vld [vmem:[%s2404_s2 + $0xf8] sm:$0xff]   ;;  %1868 = vmatpush3.bf16.msra.mxu1 %v1925_v9 }
 0x2d0   : > { %v1984_v48 = vpop.eup %1983  ;;  %v875_v54 = vmul.f32 %v1982_v42, %v590_v63  ;;  %1861 = vmatprep.subr.bf16.mxu1 %v2305_v11 }
 0x2d1   : > { %v1986_v47 = vpop.eup %1985  ;;  %v878_v50 = vmul.f32 %v1984_v48, %v593_v62 }
 0x2d2   : > { %v876_v55 = vmul.f32 %v1986_v47, %v591_v0  ;;  %v1921_v0 = vld [vmem:[%s2404_s2 + $0xf0] sm:$0xff]  }
 0x2d3   : > { %v904_v57 = vpack.c.bf16 %v878_v50, %v877_v49  ;;  %1806 = vmatprep.subr.bf16.mxu0 %v1921_v0  ;;  %1869 = vmatpush3.bf16.msra.mxu1 %v2305_v11 }
 0x2d4   : > { %v903_v60 = vpack.c.bf16 %v876_v55, %v875_v54  ;;  %1807 = vmatpush3.bf16.msra.mxu0 %v1921_v0 }
 0x2d5   : > { %1808 = vmatprep.subr.bf16.mxu0 %v1922_v1 }
 0x2d6   : > { %v1988_v2 = vpop.eup %1987  ;;  %1786 = vmatprep.mubr.bf16.mxu1 %v903_v60 }
 0x2d7   : > { %v1990_v3 = vpop.eup %1989  ;;  %1787 = vmatmul.mubr.bf16.gmra.mrb[24].mxu1 %v904_v57  ;;  %v881_v58 = vmul.f32 %v1988_v2, %v596_v15 }
 0x2d8   : > { %v1992_v4 = vpop.eup %1991  ;;  %v879_v56 = vmul.f32 %v1990_v3, %v594_v13  ;;  %1809 = vmatpush3.bf16.msra.mxu0 %v1922_v1  ;;  %v2318_v13 = vld [vmem:[%s2404_s2 + $0x128] sm:$0xff]  }
 0x2d9   : > { %v1994_v5 = vpop.eup %1993  ;;  %v882_v59 = vmul.f32 %v1992_v4, %v597_v12  ;;  %1826 = vmatprep.subr.bf16.mxu0 %v1923_v6  ;;  %v2311_v12 = vld [vmem:[%s2404_s2 + $0x120] sm:$0xff]  }
 0x2da   : > { %v880_v61 = vmul.f32 %v1994_v5, %v595_v14  ;;  %1862 = vmatprep.subr.bf16.mxu1 %v2311_v12  ;;  %v909_v14 = vsub.s32 3, %v2096_v24 }
 0x2db   : > { %v906_v62 = vpack.c.bf16 %v882_v59, %v881_v58  ;;  %1870 = vmatpush3.bf16.msra.mxu1 %v2311_v12 }
 0x2dc   : > { %v905_v63 = vpack.c.bf16 %v880_v61, %v879_v56  ;;  %1863 = vmatprep.subr.bf16.mxu1 %v2318_v13  ;;  %v2325_v15 = vrot.slane %v2102_v26, %v909_v14 }
 0x2de   : > { %1790 = vmatprep.mubr.bf16.mxu1 %v905_v63 }
 0x2df   : > { %1791 = vmatmul.mubr.bf16.gmra.mrb[28].mxu1 %v906_v62 }
 0x2e0   : > { %1871 = vmatpush3.bf16.msra.mxu1 %v2318_v13 }
 0x399   : > { %v1780_v7 = vpop.f32.mrb[16].mxu1 }
 0x39a   : > { %v1002_v10 = vadd.f32 %v1780_v7, %v2325_v15  ;;  %v993_v16 = vpop.f32.mrb[17].mxu1 }
 0x39b   : > { %v994_v17 = vadd.f32 %v993_v16, %v2325_v15  ;;  %v1781_v46 = vpop.f32.mrb[18].mxu1 }
 0x39c   : > { %v1005_v18 = vadd.f32 %v1781_v46, %v2325_v15  ;;  %v996_v19 = vpop.f32.mrb[19].mxu1  ;;  %v1058_v21 = vmax.f32 %v1002_v10, 0.0 }
 0x39d   : > { %v997_v20 = vadd.f32 %v996_v19, %v2325_v15  ;;  %v1056_v23 = vmax.f32 %v994_v17, 0.0 }
 0x39e   : > { %v1059_v22 = vmax.f32 %v1005_v18, 0.0 }
 0x39f   : > { %v1057_v30 = vmax.f32 %v997_v20, 0.0 }
 0x3a0   : > { %v1089_v37 = vpack.c.bf16 %v1059_v22, %v1058_v21 }
 0x3a1   : > { %v1088_v31 = vpack.c.bf16 %v1057_v30, %v1056_v23  ;;  %v1784_v34 = vpop.f32.mrb[20].mxu1 }
 0x3a2   : > { %v1018_v25 = vadd.f32 %v1784_v34, %v2325_v15  ;;  %v1009_v28 = vpop.f32.mrb[21].mxu1 }
 0x3a3   : > { %v1010_v33 = vadd.f32 %v1009_v28, %v2325_v15  ;;  %v1785_v35 = vpop.f32.mrb[22].mxu1  ;;  %1810 = vmatprep.mubr.bf16.mxu0 %v1088_v31 }
 0x3a4   : > { %v1021_v36 = vadd.f32 %v1785_v35, %v2325_v15  ;;  %v1012_v27 = vpop.f32.mrb[23].mxu1  ;;  %1811 = vmatmul.mubr.bf16.vlgmr.msra.gmra.mrb[32].mxu0 %v1089_v37  ;;  %v1062_v32 = vmax.f32 %v1018_v25, 0.0 }
 0x3a5   : > { %v1013_v29 = vadd.f32 %v1012_v27, %v2325_v15  ;;  %1827 = vmatpush3.bf16.msra.mxu0 %v1923_v6  ;;  %v1060_v39 = vmax.f32 %v1010_v33, 0.0 }
 0x3a6   : > { %v1063_v38 = vmax.f32 %v1021_v36, 0.0  ;;  %1828 = vmatprep.subr.bf16.mxu0 %v1924_v8 }
 0x3a7   : > { %v1061_v40 = vmax.f32 %v1013_v29, 0.0 }
 0x3a8   : > { %v1091_v41 = vpack.c.bf16 %v1063_v38, %v1062_v32 }
 0x3a9   : > { %v1090_v43 = vpack.c.bf16 %v1061_v40, %v1060_v39  ;;  %1829 = vmatpush3.bf16.msra.mxu0 %v1924_v8 }
 0x3aa   : > { %v1788_v52 = vpop.f32.mrb[24].mxu1  ;;  %1830 = vmatprep.subr.bf16.mxu0 %v1925_v9 }
 0x3ab   : > { %v1034_v53 = vadd.f32 %v1788_v52, %v2325_v15  ;;  %v1025_v44 = vpop.f32.mrb[25].mxu1  ;;  %1814 = vmatprep.mubr.bf16.mxu0 %v1090_v43 }
 0x3ac   : > { %v1026_v51 = vadd.f32 %v1025_v44, %v2325_v15  ;;  %v1789_v45 = vpop.f32.mrb[26].mxu1  ;;  %1815 = vmatmul.mubr.bf16.gmra.mrb[36].mxu0 %v1091_v41 }
 0x3ad   : > { %v1037_v42 = vadd.f32 %v1789_v45, %v2325_v15  ;;  %v1028_v48 = vpop.f32.mrb[27].mxu1  ;;  %1831 = vmatpush3.bf16.msra.mxu0 %v1925_v9  ;;  %v1066_v49 = vmax.f32 %v1034_v53, 0.0  ;;  %v1929_v9 = vld [vmem:[%s2404_s2 + $0x130] sm:$0xff]  }
 0x3ae   : > { %v1029_v47 = vadd.f32 %v1028_v48, %v2325_v15  ;;  %1832 = vmatprep.subr.bf16.mxu0 %v2305_v11  ;;  %v1064_v54 = vmax.f32 %v1026_v51, 0.0  ;;  %1864 = vmatprep.subr.bf16.mxu1 %v1929_v9 }
 0x3af   : > { %v1067_v50 = vmax.f32 %v1037_v42, 0.0  ;;  %1872 = vmatpush3.bf16.msra.mxu1 %v1929_v9 }
 0x3b0   : > { %v1065_v55 = vmax.f32 %v1029_v47, 0.0 }
 0x3b1   : > { %v1093_v57 = vpack.c.bf16 %v1067_v50, %v1066_v49  ;;  %1833 = vmatpush3.bf16.msra.mxu0 %v2305_v11  ;;  %v1930_v11 = vld [vmem:[%s2404_s2 + $0x138] sm:$0xff]  }
 0x3b2   : > { %v1092_v60 = vpack.c.bf16 %v1065_v55, %v1064_v54  ;;  %v1792_v2 = vpop.f32.mrb[28].mxu1  ;;  %1834 = vmatprep.subr.bf16.mxu0 %v2311_v12  ;;  %1865 = vmatprep.subr.bf16.mxu1 %v1930_v11 }
 0x3b3   : > { %v1050_v3 = vadd.f32 %v1792_v2, %v2325_v15  ;;  %v1041_v4 = vpop.f32.mrb[29].mxu1  ;;  %1873 = vmatpush3.bf16.msra.mxu1 %v1930_v11 }
 0x3b4   : > { %v1042_v5 = vadd.f32 %v1041_v4, %v2325_v15  ;;  %v1793_v58 = vpop.f32.mrb[30].mxu1  ;;  %1818 = vmatprep.mubr.bf16.mxu0 %v1092_v60 }
 0x3b5   : > { %v1053_v59 = vadd.f32 %v1793_v58, %v2325_v15  ;;  %v1044_v56 = vpop.f32.mrb[31].mxu1  ;;  %1819 = vmatmul.mubr.bf16.gmra.mrb[40].mxu0 %v1093_v57  ;;  %v1070_v62 = vmax.f32 %v1050_v3, 0.0 }
 0x3b6   : > { %v1045_v61 = vadd.f32 %v1044_v56, %v2325_v15  ;;  %1835 = vmatpush3.bf16.msra.mxu0 %v2311_v12  ;;  %v1068_v0 = vmax.f32 %v1042_v5, 0.0  ;;  %v1098_v12 = vsub.s32 4, %v2096_v24 }
 0x3b7   : > { %v1071_v63 = vmax.f32 %v1053_v59, 0.0  ;;  %1836 = vmatprep.subr.bf16.mxu0 %v2318_v13 }
 0x3b8   : > { %v1069_v1 = vmax.f32 %v1045_v61, 0.0 }
 0x3b9   : > { %v1095_v6 = vpack.c.bf16 %v1071_v63, %v1070_v62 }
 0x3ba   : > { %v1094_v8 = vpack.c.bf16 %v1069_v1, %v1068_v0  ;;  %1837 = vmatpush3.bf16.msra.mxu0 %v2318_v13  ;;  %v1099_v13 = vrot.slane %v2102_v26, %v1098_v12  ;;  %v1287_v1 = vsub.s32 5, %v2096_v24 }
 0x3bb   : > { %1838 = vmatprep.subr.bf16.mxu0 %v1929_v9 }
 0x3bc   : > { %1822 = vmatprep.mubr.bf16.mxu0 %v1094_v8 }
 0x3bd   : > { %1823 = vmatmul.mubr.bf16.gmra.mrb[44].mxu0 %v1095_v6  ;;  %v1995_v6 = vld [vmem:[%s2405_s3] sm:$0xff] }
 0x3be   : > { %1839 = vmatpush3.bf16.msra.mxu0 %v1929_v9  ;;  %v1288_v8 = vrot.slane %v1995_v6, %v1287_v1 }
 0x3bf   : > { %1840 = vmatprep.subr.bf16.mxu0 %v1930_v11 }
 0x3c2   : > { %1841 = vmatpush3.bf16.msra.mxu0 %v1930_v11 }
 0x477   : > { %v1812_v14 = vpop.f32.mrb[32].mxu0 }
 0x478   : > { %v1191_v15 = vadd.f32 %v1812_v14, %v1099_v13  ;;  %v1182_v7 = vpop.f32.mrb[33].mxu0 }
 0x479   : > { %v1183_v10 = vadd.f32 %v1182_v7, %v1099_v13  ;;  %v1813_v16 = vpop.f32.mrb[34].mxu0 }
 0x47a   : > { %v1194_v17 = vadd.f32 %v1813_v16, %v1099_v13  ;;  %v1185_v46 = vpop.f32.mrb[35].mxu0  ;;  %v1247_v19 = vmax.f32 %v1191_v15, 0.0 }
 0x47b   : > { %v1186_v18 = vadd.f32 %v1185_v46, %v1099_v13  ;;  %v1245_v21 = vmax.f32 %v1183_v10, 0.0 }
 0x47c   : > { %v1248_v20 = vmax.f32 %v1194_v17, 0.0 }
 0x47d   : > { %v1246_v22 = vmax.f32 %v1186_v18, 0.0 }
 0x47e   : > { %v1278_v23 = vpack.c.bf16 %v1248_v20, %v1247_v19 }
 0x47f   : > { %v1277_v30 = vpack.c.bf16 %v1246_v22, %v1245_v21  ;;  %v1816_v37 = vpop.f32.mrb[36].mxu0 }
 0x480   : > { %v1207_v31 = vadd.f32 %v1816_v37, %v1099_v13  ;;  %v1198_v34 = vpop.f32.mrb[37].mxu0 }
 0x481   : > { %v1199_v25 = vadd.f32 %v1198_v34, %v1099_v13  ;;  %v1817_v28 = vpop.f32.mrb[38].mxu0  ;;  %1842 = vmatprep.mubr.bf16.mxu0 %v1277_v30 }
 0x482   : > { %v1210_v26 = vadd.f32 %v1817_v28, %v1099_v13  ;;  %v1201_v33 = vpop.f32.mrb[39].mxu0  ;;  %1843 = vmatmul.mubr.bf16.vlgmr.msra.gmra.mrb[48].mxu0 %v1278_v23  ;;  %v1251_v36 = vmax.f32 %v1207_v31, 0.0 }
 0x483   : > { %v1202_v35 = vadd.f32 %v1201_v33, %v1099_v13  ;;  %v1249_v29 = vmax.f32 %v1199_v25, 0.0 }
 0x484   : > { %v1252_v27 = vmax.f32 %v1210_v26, 0.0 }
 0x485   : > { %v1250_v32 = vmax.f32 %v1202_v35, 0.0 }
 0x486   : > { %v1280_v38 = vpack.c.bf16 %v1252_v27, %v1251_v36 }
 0x487   : > { %v1279_v39 = vpack.c.bf16 %v1250_v32, %v1249_v29 }
 0x488   : > { %v1820_v40 = vpop.f32.mrb[40].mxu0 }
 0x489   : > { %v1223_v41 = vadd.f32 %v1820_v40, %v1099_v13  ;;  %v1214_v43 = vpop.f32.mrb[41].mxu0  ;;  %1846 = vmatprep.mubr.bf16.mxu1 %v1279_v39 }
 0x48a   : > { %v1215_v52 = vadd.f32 %v1214_v43, %v1099_v13  ;;  %v1821_v53 = vpop.f32.mrb[42].mxu0  ;;  %1847 = vmatmul.mubr.bf16.vlgmr.msra.gmra.mrb[32].mxu1 %v1280_v38 }
 0x48b   : > { %v1226_v44 = vadd.f32 %v1821_v53, %v1099_v13  ;;  %v1217_v51 = vpop.f32.mrb[43].mxu0  ;;  %v1255_v42 = vmax.f32 %v1223_v41, 0.0 }
 0x48c   : > { %v1218_v45 = vadd.f32 %v1217_v51, %v1099_v13  ;;  %v1253_v47 = vmax.f32 %v1215_v52, 0.0 }
 0x48d   : > { %v1256_v48 = vmax.f32 %v1226_v44, 0.0 }
 0x48e   : > { %v1254_v49 = vmax.f32 %v1218_v45, 0.0 }
 0x48f   : > { %v1282_v50 = vpack.c.bf16 %v1256_v48, %v1255_v42 }
 0x490   : > { %v1281_v54 = vpack.c.bf16 %v1254_v49, %v1253_v47  ;;  %v1824_v55 = vpop.f32.mrb[44].mxu0 }
 0x491   : > { %v1239_v57 = vadd.f32 %v1824_v55, %v1099_v13  ;;  %v1230_v60 = vpop.f32.mrb[45].mxu0 }
 0x492   : > { %v1231_v2 = vadd.f32 %v1230_v60, %v1099_v13  ;;  %v1825_v3 = vpop.f32.mrb[46].mxu0  ;;  %1850 = vmatprep.mubr.bf16.mxu1 %v1281_v54 }
 0x493   : > { %v1242_v4 = vadd.f32 %v1825_v3, %v1099_v13  ;;  %v1233_v5 = vpop.f32.mrb[47].mxu0  ;;  %1851 = vmatmul.mubr.bf16.gmra.mrb[36].mxu1 %v1282_v50  ;;  %v1259_v59 = vmax.f32 %v1239_v57, 0.0 }
 0x494   : > { %v1234_v58 = vadd.f32 %v1233_v5, %v1099_v13  ;;  %v1257_v61 = vmax.f32 %v1231_v2, 0.0 }
 0x495   : > { %v1260_v56 = vmax.f32 %v1242_v4, 0.0 }
 0x496   : > { %v1258_v62 = vmax.f32 %v1234_v58, 0.0 }
 0x497   : > { %v1284_v63 = vpack.c.bf16 %v1260_v56, %v1259_v59 }
 0x498   : > { %v1283_v0 = vpack.c.bf16 %v1258_v62, %v1257_v61 }
 0x49a   : > { %1854 = vmatprep.mubr.bf16.mxu1 %v1283_v0 }
 0x49b   : > { %1855 = vmatmul.mubr.bf16.gmra.mrb[40].mxu1 %v1284_v63 }
 0x555   : > { %v1844_v9 = vpop.f32.mrb[48].mxu0 }
 0x556   : > { %v1380_v11 = vadd.f32 %v1844_v9, %v1288_v8  ;;  %v1371_v24 = vpop.f32.mrb[49].mxu0 }
 0x557   : > { %v1372_v12 = vadd.f32 %v1371_v24, %v1288_v8  ;;  %v1845_v13 = vpop.f32.mrb[50].mxu0 }
 0x558   : > { %1437 = vst.msk [vmem:[%s2365_s13 + $0x10] sm:$0xff] %vm1434_vm1, %v1380_v11  ;;  %v1383_v14 = vadd.f32 %v1845_v13, %v1288_v8  ;;  %v1374_v15 = vpop.f32.mrb[51].mxu0 }
 0x559   : > { %1435 = vst.msk [vmem:[%s2365_s13] sm:$0xff] %vm1434_vm1, %v1372_v12  ;;  %v1375_v7 = vadd.f32 %v1374_v15, %v1288_v8 }
 0x55a   : > { %1438 = vst.msk [vmem:[%s2365_s13 + $0x18] sm:$0xff] %vm1434_vm1, %v1383_v14 }
 0x55b   : > { %1436 = vst.msk [vmem:[%s2365_s13 + $0x8] sm:$0xff] %vm1434_vm1, %v1375_v7 }
 0x55d   : > { %v1848_v10 = vpop.f32.mrb[32].mxu1 }
 0x55e   : > { %v1396_v16 = vadd.f32 %v1848_v10, %v1288_v8  ;;  %v1387_v17 = vpop.f32.mrb[33].mxu1 }
 0x55f   : > { %v1388_v46 = vadd.f32 %v1387_v17, %v1288_v8  ;;  %v1849_v18 = vpop.f32.mrb[34].mxu1 }
 0x560   : > { %1441 = vst.msk [vmem:[%s2365_s13 + $0x30] sm:$0xff] %vm1434_vm1, %v1396_v16  ;;  %v1399_v19 = vadd.f32 %v1849_v18, %v1288_v8  ;;  %v1390_v20 = vpop.f32.mrb[35].mxu1 }
 0x561   : > { %1439 = vst.msk [vmem:[%s2365_s13 + $0x20] sm:$0xff] %vm1434_vm1, %v1388_v46  ;;  %v1391_v21 = vadd.f32 %v1390_v20, %v1288_v8 }
 0x562   : > { %1442 = vst.msk [vmem:[%s2365_s13 + $0x38] sm:$0xff] %vm1434_vm1, %v1399_v19 }
 0x563   : > { %1440 = vst.msk [vmem:[%s2365_s13 + $0x28] sm:$0xff] %vm1434_vm1, %v1391_v21 }
 0x566   : > { %v1852_v22 = vpop.f32.mrb[36].mxu1 }
 0x567   : > { %v1412_v23 = vadd.f32 %v1852_v22, %v1288_v8  ;;  %v1403_v30 = vpop.f32.mrb[37].mxu1 }
 0x568   : > { %v1404_v37 = vadd.f32 %v1403_v30, %v1288_v8  ;;  %v1853_v31 = vpop.f32.mrb[38].mxu1 }
 0x569   : > { %1445 = vst.msk [vmem:[%s2365_s13 + $0x50] sm:$0xff] %vm1434_vm1, %v1412_v23  ;;  %v1415_v34 = vadd.f32 %v1853_v31, %v1288_v8  ;;  %v1406_v25 = vpop.f32.mrb[39].mxu1 }
 0x56a   : > { %1443 = vst.msk [vmem:[%s2365_s13 + $0x40] sm:$0xff] %vm1434_vm1, %v1404_v37  ;;  %v1407_v28 = vadd.f32 %v1406_v25, %v1288_v8 }
 0x56b   : > { %1446 = vst.msk [vmem:[%s2365_s13 + $0x58] sm:$0xff] %vm1434_vm1, %v1415_v34 }
 0x56c   : > { %1444 = vst.msk [vmem:[%s2365_s13 + $0x48] sm:$0xff] %vm1434_vm1, %v1407_v28 }
 0x56e   : > { %v1856_v26 = vpop.f32.mrb[40].mxu1 }
 0x56f   : > { %v1428_v33 = vadd.f32 %v1856_v26, %v1288_v8  ;;  %v1419_v35 = vpop.f32.mrb[41].mxu1 }
 0x570   : > { %v1420_v36 = vadd.f32 %v1419_v35, %v1288_v8  ;;  %v1857_v27 = vpop.f32.mrb[42].mxu1 }
 0x571   : > { %1449 = vst.msk [vmem:[%s2365_s13 + $0x70] sm:$0xff] %vm1434_vm1, %v1428_v33  ;;  %v1431_v29 = vadd.f32 %v1857_v27, %v1288_v8  ;;  %v1422_v32 = vpop.f32.mrb[43].mxu1 }
 0x572   : > { %1447 = vst.msk [vmem:[%s2365_s13 + $0x60] sm:$0xff] %vm1434_vm1, %v1420_v36  ;;  %v1423_v38 = vadd.f32 %v1422_v32, %v1288_v8 }
 0x573   : > { %1450 = vst.msk [vmem:[%s2365_s13 + $0x78] sm:$0xff] %vm1434_vm1, %v1431_v29 }
 0x574   : > { %1448 = vst.msk [vmem:[%s2365_s13 + $0x68] sm:$0xff] %vm1434_vm1, %v1423_v38 }
 0x575 PF: > { %s14_s15 = sadd.s32 1, %s2002_s15  }
 0x576   : > { %p11_p4 = scmp.ge.s32.totalorder %s14_s15, 10  }
 0x578   :  { %13 = sbr.rel (!%p11_p4) target bundleno = 1 (0x1), region = 66 }

</bundles_post_ra>
